<compile_context>
chip_gen: v7x
topology: tpu7x:2x2x1
jax: 0.10.0
libtpu: 0.0.40
codegen_flags: <defaults>
</compile_context>

<pallas_src>
import jax
import jax.numpy as jnp
from jax.experimental import pallas as pl
from jax.experimental.pallas import tpu as pltpu

# ---------------- model config (small, consistent with the module) ------------
VOCAB = 100          # vocablen
EMBED = 32           # embed_len
HIDDEN = 32          # hidden_dim
N_LAYERS = 2         # n_layers
N_CLASSES = 3        # len(target_classes)
BATCH = 2
SEQ = 8

VOCAB_PAD = 128      # pad vocab to lane width -> clean (8,128) layout, exact one-hot
CLASS_PAD = 128      # lane-dense output store


# ------------------------------ Pallas kernel ---------------------------------
def make_rnn_kernel(n_layers: int, seq_len: int, batch: int, hidden: int,
                    vocab_pad: int):
    """Kernel ref order (all VMEM, whole arrays):
      ids_ref      (T*B, 1) int32      row k = t*B + b  <- token id x[b, t]
      fused_ref    (vocab_pad, L*H)    [emb_pad @ W_ih0^T | 0]
      xwb_bias_ref (1, L*H)            [b_ih0+b_hh0 | b_ih1+b_hh1 | ...]
      bias_all_ref (1, L*H)            [0 | b_ih1+b_hh1 | ...]   (epilogue waves)
      hcat0_ref    (B, L*H)            initial hidden states, layer-major columns
      wblock_ref   (L*H, L*H)          block recurrent weight (pre-transposed)
      wlin_ref     (L*H, CLASS_PAD)    W_lin^T in the top-layer rows, rest zero
      blin_ref     (1, CLASS_PAD)
      out_ref      (B, CLASS_PAD)
    """
    L, T, B, H = n_layers, seq_len, batch, hidden
    LH = L * H

    def kernel(ids_ref, fused_ref, xwb_bias_ref, bias_all_ref, hcat0_ref,
               wblock_ref, wlin_ref, blin_ref, out_ref):
        # ---- fused embedding gather + layer-0 input projection (one MXU push) ---
        ids = ids_ref[...]                                            # (T*B, 1)
        iota = jax.lax.broadcasted_iota(jnp.int32, (T * B, vocab_pad), 1)
        one_hot = (iota == ids).astype(jnp.float32)                   # (T*B, Vpad)
        # xwb[t*B+b] = emb[ids[b,t]] @ Wih0^T + bias0  (cols :H), + bias_l (l>=1)
        xwb = jnp.dot(one_hot, fused_ref[...],
                      preferred_element_type=jnp.float32) + xwb_bias_ref[...]

        wblock = wblock_ref[...]                                      # (LH, LH)
        bias_all = bias_all_ref[...]                                  # (1, LH)
        hcat = hcat0_ref[...]                                         # (B, LH)
        col = jax.lax.broadcasted_iota(jnp.int32, (B, LH), 1)         # lane ids

        # ---- wave-pipelined, fused recurrence: T + L - 1 serial stages ----------
        # Invariant entering wave w: hcat columns [l*H:(l+1)*H] hold h_l[w-1-l]
        # (h_l[-1] = initial hidden of layer l).
        for w in range(T + L - 1):
            out = jnp.dot(hcat, wblock, preferred_element_type=jnp.float32)
            if w < T:
                pre = out + xwb[w * B:(w + 1) * B, :]   # layer-0 input + all biases
            else:
                pre = out + bias_all                    # epilogue: no layer-0 input
            lo = max(0, w - T + 1)                      # active layers are l in
            hi = min(L - 1, w)                          #   [lo, hi] (contiguous)
            if lo == 0 and hi == L - 1:
                hcat = jnp.tanh(pre)                    # steady state: one tanh
            else:
                mask = (col >= lo * H) & (col < (hi + 1) * H)
                hcat = jnp.where(mask, jnp.tanh(pre), hcat)

        # ---- linear head on the top layer's final hidden (lane-dense store) -----
        # wlin_ref is zero outside the top-layer rows, so hcat @ wlin == h_top @ W^T
        out_ref[...] = (jnp.dot(hcat, wlin_ref[...],
                                preferred_element_type=jnp.float32)
                        + blin_ref[...])

    return kernel


# ------------------------------ wrapper ----------------------------------------
def rnn_classifier_forward(x_idx, params):
    """x_idx: int32 (B, T) token ids. Returns logits (B, N_CLASSES) float32."""
    B, T = x_idx.shape
    H, L, C = HIDDEN, N_LAYERS, N_CLASSES
    LH = L * H

    # token ids, row k = t*B + b
    ids2d = x_idx.astype(jnp.int32).T.reshape(T * B, 1)

    # --- parameter packing (param-only prep; hoistable / one-time in serving) ---
    emb = params["embedding"].astype(jnp.float32)                    # (V, E)
    emb_pad = jnp.zeros((VOCAB_PAD, emb.shape[1]), jnp.float32).at[:emb.shape[0]].set(emb)
    fused = jnp.zeros((VOCAB_PAD, LH), jnp.float32).at[:, :H].set(
        emb_pad @ params["w_ih_0"].T)                                # (Vpad, LH)

    bias_all = jnp.zeros((1, LH), jnp.float32)
    for l in range(1, L):
        bias_all = bias_all.at[0, l * H:(l + 1) * H].set(
            params[f"b_ih_{l}"] + params[f"b_hh_{l}"])
    xwb_bias = bias_all.at[0, :H].set(params["b_ih_0"] + params["b_hh_0"])

    wblock = jnp.zeros((LH, LH), jnp.float32)
    for l in range(L):
        wblock = wblock.at[l * H:(l + 1) * H, l * H:(l + 1) * H].set(
            params[f"w_hh_{l}"].T)
        if l >= 1:
            wblock = wblock.at[(l - 1) * H:l * H, l * H:(l + 1) * H].set(
                params[f"w_ih_{l}"].T)

    # initial hidden states, layer-major columns: hcat0[b, l*H+j] = h0[l, b, j]
    hcat0 = jnp.transpose(params["h0"].astype(jnp.float32), (1, 0, 2)).reshape(B, LH)

    wlin_full = jnp.zeros((LH, CLASS_PAD), jnp.float32).at[(L - 1) * H:, :C].set(
        params["w_lin"].T)
    blin_pad = jnp.zeros((1, CLASS_PAD), jnp.float32).at[0, :C].set(params["b_lin"])

    inputs = (ids2d, fused, xwb_bias, bias_all, hcat0, wblock, wlin_full, blin_pad)

    vmem = pl.BlockSpec(memory_space=pltpu.MemorySpace.VMEM)
    out = pl.pallas_call(
        make_rnn_kernel(L, T, B, H, VOCAB_PAD),
        out_shape=jax.ShapeDtypeStruct((B, CLASS_PAD), jnp.float32),
        in_specs=[vmem] * len(inputs),
        out_specs=vmem,
    )(*inputs)
    return out[:, :C]


# ------------------------- deterministic parameter init -------------------------
def init_params(key):
    keys = iter(jax.random.split(key, 32))
    p = {}
    p["embedding"] = jax.random.normal(next(keys), (VOCAB, EMBED), jnp.float32) * 0.1
    for l in range(N_LAYERS):
        in_dim = EMBED if l == 0 else HIDDEN
        p[f"w_ih_{l}"] = jax.random.normal(next(keys), (HIDDEN, in_dim), jnp.float32) * 0.1
        p[f"w_hh_{l}"] = jax.random.normal(next(keys), (HIDDEN, HIDDEN), jnp.float32) * 0.1
        p[f"b_ih_{l}"] = jax.random.normal(next(keys), (HIDDEN,), jnp.float32) * 0.1
        p[f"b_hh_{l}"] = jax.random.normal(next(keys), (HIDDEN,), jnp.float32) * 0.1
    p["w_lin"] = jax.random.normal(next(keys), (N_CLASSES, HIDDEN), jnp.float32) * 0.1
    p["b_lin"] = jax.random.normal(next(keys), (N_CLASSES,), jnp.float32) * 0.1
    # TODO(synk): PyTorch draws h0 = torch.randn(...) on every forward; here it is
    # a fixed deterministic tensor for reproducibility.
    p["h0"] = jax.random.normal(next(keys), (N_LAYERS, BATCH, HIDDEN), jnp.float32)
    return p


# --------------------------- pure-JAX reference (check) -------------------------
def rnn_classifier_ref(x_idx, params):
    emb = jnp.take(params["embedding"], x_idx, axis=0)   # (B, T, E)
    x_seq = emb
    for l in range(N_LAYERS):
        wih, whh = params[f"w_ih_{l}"], params[f"w_hh_{l}"]
        bih, bhh = params[f"b_ih_{l}"], params[f"b_hh_{l}"]
        h = params["h0"][l]
        outs = []
        for t in range(x_seq.shape[1]):
            h = jnp.tanh(x_seq[:, t] @ wih.T + bih + h @ whh.T + bhh)
            outs.append(h)
        x_seq = jnp.stack(outs, axis=1)
    return x_seq[:, -1] @ params["w_lin"].T + params["b_lin"]


if __name__ == "__main__":
    key = jax.random.PRNGKey(0)
    k_tok, k_params = jax.random.split(key)
    x_idx = jax.random.randint(k_tok, (BATCH, SEQ), 0, VOCAB, dtype=jnp.int32)
    params = init_params(k_params)

    forward = jax.jit(rnn_classifier_forward)   # fuses wrapper weight prep with the kernel
    logits = forward(x_idx, params)
    logits = jax.block_until_ready(logits)

    ref = rnn_classifier_ref(x_idx, params)
    assert logits.shape == (BATCH, N_CLASSES)
    assert jnp.allclose(logits, ref, atol=1e-4, rtol=1e-4), (logits, ref)

    print("KERNEL_OK")
</pallas_src>

<mosaic_0001>
module attributes {stable_mosaic.version = 11 : i64} {
  func.func @kernel(%arg0: memref<16x1xi32, #tpu.memory_space<vmem>>, %arg1: memref<128x64xf32, #tpu.memory_space<vmem>>, %arg2: memref<1x64xf32, #tpu.memory_space<vmem>>, %arg3: memref<1x64xf32, #tpu.memory_space<vmem>>, %arg4: memref<2x64xf32, #tpu.memory_space<vmem>>, %arg5: memref<64x64xf32, #tpu.memory_space<vmem>>, %arg6: memref<64x128xf32, #tpu.memory_space<vmem>>, %arg7: memref<1x128xf32, #tpu.memory_space<vmem>>, %arg8: memref<2x128xf32, #tpu.memory_space<vmem>>) attributes {dimension_semantics = [], scalar_prefetch = 0 : i64, scratch_operands = 0 : i64, tpu.core_type = #tpu.core_type<tc>} {
    %c0 = arith.constant 0 : index
    %c0_0 = arith.constant 0 : index
    %0 = vector.load %arg0[%c0, %c0_0] : memref<16x1xi32, #tpu.memory_space<vmem>>, vector<16x1xi32>
    %1 = tpu.iota {dimensions = array<i32: 1>} : vector<16x128xi32>
    %2 = vector.broadcast %0 : vector<16x1xi32> to vector<16x128xi32>
    %3 = arith.cmpi eq, %1, %2 : vector<16x128xi32>
    %4 = arith.extui %3 : vector<16x128xi1> to vector<16x128xi32>
    %5 = arith.sitofp %4 : vector<16x128xi32> to vector<16x128xf32>
    %c0_1 = arith.constant 0 : index
    %c0_2 = arith.constant 0 : index
    %6 = vector.load %arg1[%c0_1, %c0_2] : memref<128x64xf32, #tpu.memory_space<vmem>>, vector<128x64xf32>
    %cst = arith.constant dense<0.000000e+00> : vector<16x64xf32>
    %7 = tpu.matmul %5, %6, %cst {dimension_numbers = #tpu.dot_dimension_numbers<[1], [0], [0], [1], [0, 0, 1, 1], [], []>} : vector<16x128xf32>, vector<128x64xf32>, vector<16x64xf32> -> vector<16x64xf32>
    %c0_3 = arith.constant 0 : index
    %c0_4 = arith.constant 0 : index
    %8 = vector.load %arg2[%c0_3, %c0_4] : memref<1x64xf32, #tpu.memory_space<vmem>>, vector<1x64xf32>
    %9 = vector.broadcast %8 : vector<1x64xf32> to vector<16x64xf32>
    %10 = arith.addf %7, %9 : vector<16x64xf32>
    %c0_5 = arith.constant 0 : index
    %c0_6 = arith.constant 0 : index
    %11 = vector.load %arg5[%c0_5, %c0_6] : memref<64x64xf32, #tpu.memory_space<vmem>>, vector<64x64xf32>
    %c0_7 = arith.constant 0 : index
    %c0_8 = arith.constant 0 : index
    %12 = vector.load %arg3[%c0_7, %c0_8] : memref<1x64xf32, #tpu.memory_space<vmem>>, vector<1x64xf32>
    %c0_9 = arith.constant 0 : index
    %c0_10 = arith.constant 0 : index
    %13 = vector.load %arg4[%c0_9, %c0_10] : memref<2x64xf32, #tpu.memory_space<vmem>>, vector<2x64xf32>
    %14 = tpu.iota {dimensions = array<i32: 1>} : vector<2x64xi32>
    %cst_11 = arith.constant dense<0.000000e+00> : vector<2x64xf32>
    %15 = tpu.matmul %13, %11, %cst_11 {dimension_numbers = #tpu.dot_dimension_numbers<[1], [0], [0], [1], [0, 0, 1, 1], [], []>} : vector<2x64xf32>, vector<64x64xf32>, vector<2x64xf32> -> vector<2x64xf32>
    %16 = vector.extract_strided_slice %10 {offsets = [0, 0], sizes = [2, 64], strides = [1, 1]} : vector<16x64xf32> to vector<2x64xf32>
    %17 = arith.addf %15, %16 : vector<2x64xf32>
    %c0_i32 = arith.constant 0 : i32
    %18 = vector.broadcast %c0_i32 : i32 to vector<2x64xi32>
    %19 = arith.cmpi sge, %14, %18 : vector<2x64xi32>
    %c32_i32 = arith.constant 32 : i32
    %20 = vector.broadcast %c32_i32 : i32 to vector<2x64xi32>
    %21 = arith.cmpi slt, %14, %20 : vector<2x64xi32>
    %22 = arith.andi %19, %21 : vector<2x64xi1>
    %23 = math.tanh %17 : vector<2x64xf32>
    %24 = arith.select %22, %23, %13 : vector<2x64xi1>, vector<2x64xf32>
    %cst_12 = arith.constant dense<0.000000e+00> : vector<2x64xf32>
    %25 = tpu.matmul %24, %11, %cst_12 {dimension_numbers = #tpu.dot_dimension_numbers<[1], [0], [0], [1], [0, 0, 1, 1], [], []>} : vector<2x64xf32>, vector<64x64xf32>, vector<2x64xf32> -> vector<2x64xf32>
    %26 = vector.extract_strided_slice %10 {offsets = [2, 0], sizes = [2, 64], strides = [1, 1]} : vector<16x64xf32> to vector<2x64xf32>
    %27 = arith.addf %25, %26 : vector<2x64xf32>
    %28 = math.tanh %27 : vector<2x64xf32>
    %cst_13 = arith.constant dense<0.000000e+00> : vector<2x64xf32>
    %29 = tpu.matmul %28, %11, %cst_13 {dimension_numbers = #tpu.dot_dimension_numbers<[1], [0], [0], [1], [0, 0, 1, 1], [], []>} : vector<2x64xf32>, vector<64x64xf32>, vector<2x64xf32> -> vector<2x64xf32>
    %30 = vector.extract_strided_slice %10 {offsets = [4, 0], sizes = [2, 64], strides = [1, 1]} : vector<16x64xf32> to vector<2x64xf32>
    %31 = arith.addf %29, %30 : vector<2x64xf32>
    %32 = math.tanh %31 : vector<2x64xf32>
    %cst_14 = arith.constant dense<0.000000e+00> : vector<2x64xf32>
    %33 = tpu.matmul %32, %11, %cst_14 {dimension_numbers = #tpu.dot_dimension_numbers<[1], [0], [0], [1], [0, 0, 1, 1], [], []>} : vector<2x64xf32>, vector<64x64xf32>, vector<2x64xf32> -> vector<2x64xf32>
    %34 = vector.extract_strided_slice %10 {offsets = [6, 0], sizes = [2, 64], strides = [1, 1]} : vector<16x64xf32> to vector<2x64xf32>
    %35 = arith.addf %33, %34 : vector<2x64xf32>
    %36 = math.tanh %35 : vector<2x64xf32>
    %cst_15 = arith.constant dense<0.000000e+00> : vector<2x64xf32>
    %37 = tpu.matmul %36, %11, %cst_15 {dimension_numbers = #tpu.dot_dimension_numbers<[1], [0], [0], [1], [0, 0, 1, 1], [], []>} : vector<2x64xf32>, vector<64x64xf32>, vector<2x64xf32> -> vector<2x64xf32>
    %38 = vector.extract_strided_slice %10 {offsets = [8, 0], sizes = [2, 64], strides = [1, 1]} : vector<16x64xf32> to vector<2x64xf32>
    %39 = arith.addf %37, %38 : vector<2x64xf32>
    %40 = math.tanh %39 : vector<2x64xf32>
    %cst_16 = arith.constant dense<0.000000e+00> : vector<2x64xf32>
    %41 = tpu.matmul %40, %11, %cst_16 {dimension_numbers = #tpu.dot_dimension_numbers<[1], [0], [0], [1], [0, 0, 1, 1], [], []>} : vector<2x64xf32>, vector<64x64xf32>, vector<2x64xf32> -> vector<2x64xf32>
    %42 = vector.extract_strided_slice %10 {offsets = [10, 0], sizes = [2, 64], strides = [1, 1]} : vector<16x64xf32> to vector<2x64xf32>
    %43 = arith.addf %41, %42 : vector<2x64xf32>
    %44 = math.tanh %43 : vector<2x64xf32>
    %cst_17 = arith.constant dense<0.000000e+00> : vector<2x64xf32>
    %45 = tpu.matmul %44, %11, %cst_17 {dimension_numbers = #tpu.dot_dimension_numbers<[1], [0], [0], [1], [0, 0, 1, 1], [], []>} : vector<2x64xf32>, vector<64x64xf32>, vector<2x64xf32> -> vector<2x64xf32>
    %46 = vector.extract_strided_slice %10 {offsets = [12, 0], sizes = [2, 64], strides = [1, 1]} : vector<16x64xf32> to vector<2x64xf32>
    %47 = arith.addf %45, %46 : vector<2x64xf32>
    %48 = math.tanh %47 : vector<2x64xf32>
    %cst_18 = arith.constant dense<0.000000e+00> : vector<2x64xf32>
    %49 = tpu.matmul %48, %11, %cst_18 {dimension_numbers = #tpu.dot_dimension_numbers<[1], [0], [0], [1], [0, 0, 1, 1], [], []>} : vector<2x64xf32>, vector<64x64xf32>, vector<2x64xf32> -> vector<2x64xf32>
    %50 = vector.extract_strided_slice %10 {offsets = [14, 0], sizes = [2, 64], strides = [1, 1]} : vector<16x64xf32> to vector<2x64xf32>
    %51 = arith.addf %49, %50 : vector<2x64xf32>
    %52 = math.tanh %51 : vector<2x64xf32>
    %cst_19 = arith.constant dense<0.000000e+00> : vector<2x64xf32>
    %53 = tpu.matmul %52, %11, %cst_19 {dimension_numbers = #tpu.dot_dimension_numbers<[1], [0], [0], [1], [0, 0, 1, 1], [], []>} : vector<2x64xf32>, vector<64x64xf32>, vector<2x64xf32> -> vector<2x64xf32>
    %54 = vector.broadcast %12 : vector<1x64xf32> to vector<2x64xf32>
    %55 = arith.addf %53, %54 : vector<2x64xf32>
    %c32_i32_20 = arith.constant 32 : i32
    %56 = vector.broadcast %c32_i32_20 : i32 to vector<2x64xi32>
    %57 = arith.cmpi sge, %14, %56 : vector<2x64xi32>
    %c64_i32 = arith.constant 64 : i32
    %58 = vector.broadcast %c64_i32 : i32 to vector<2x64xi32>
    %59 = arith.cmpi slt, %14, %58 : vector<2x64xi32>
    %60 = arith.andi %57, %59 : vector<2x64xi1>
    %61 = math.tanh %55 : vector<2x64xf32>
    %62 = arith.select %60, %61, %52 : vector<2x64xi1>, vector<2x64xf32>
    %c0_21 = arith.constant 0 : index
    %c0_22 = arith.constant 0 : index
    %63 = vector.load %arg6[%c0_21, %c0_22] : memref<64x128xf32, #tpu.memory_space<vmem>>, vector<64x128xf32>
    %cst_23 = arith.constant dense<0.000000e+00> : vector<2x128xf32>
    %64 = tpu.matmul %62, %63, %cst_23 {dimension_numbers = #tpu.dot_dimension_numbers<[1], [0], [0], [1], [0, 0, 1, 1], [], []>} : vector<2x64xf32>, vector<64x128xf32>, vector<2x128xf32> -> vector<2x128xf32>
    %c0_24 = arith.constant 0 : index
    %c0_25 = arith.constant 0 : index
    %65 = vector.load %arg7[%c0_24, %c0_25] : memref<1x128xf32, #tpu.memory_space<vmem>>, vector<1x128xf32>
    %66 = vector.broadcast %65 : vector<1x128xf32> to vector<2x128xf32>
    %67 = arith.addf %64, %66 : vector<2x128xf32>
    %c0_26 = arith.constant 0 : index
    %c0_27 = arith.constant 0 : index
    %68 = vector.load %arg8[%c0_26, %c0_27] : memref<2x128xf32, #tpu.memory_space<vmem>>, vector<2x128xf32>
    tpu.vector_store %arg8[%c0_26, %c0_27], %67 {strides = array<i32>} : memref<2x128xf32, #tpu.memory_space<vmem>>, vector<2x128xf32>,
    return
  }
}

</mosaic_0001>

<bundles_post_ra>
// kernel: rnn_classifier_forward.1
= control target key start
LH: loop header
LB: loop body
LE: loop exit
PB: predicated region body
PF: predicated region fallthrough
CT: control target
= control target key end

     0   :  { %v1503_v2 = vmov 0   ;;  %v1504_v6 = vmov 0.0|0.0   ;;  %vm1505_vm0 = vmmov 0   ;;  %v1506_v23 = vmov 0.0   ;;  %s1807_s0 = inlined_call_operand.vmem [shape: s32[16,1], index: 0, kind: input, shape index: {}]   ;;  %s1808_s1 = inlined_call_operand.vmem [shape: f32[128,64], index: 1, kind: input, shape index: {}]   ;;  %s1809_s2 = inlined_call_operand.vmem [shape: f32[1,64], index: 2, kind: input, shape index: {}]   ;;  %s1810_s3 = inlined_call_operand.vmem [shape: f32[1,64], index: 3, kind: input, shape index: {}]   ;;  %s1811_s4 = inlined_call_operand.vmem [shape: f32[2,64], index: 4, kind: input, shape index: {}]   ;;  %s1812_s5 = inlined_call_operand.vmem [shape: f32[64,64], index: 5, kind: input, shape index: {}]   ;;  %s1813_s6 = inlined_call_operand.vmem [shape: f32[64,128], index: 6, kind: input, shape index: {}]   ;;  %s1814_s7 = inlined_call_operand.vmem [shape: f32[1,128], index: 7, kind: input, shape index: {}]   ;;  %s1815_s8 = inlined_call_operand.hbm [shape: f32[2,128], index: 8, kind: output, shape index: {}]  }
   0x1   :  { %v30_v0 = vld [vmem:[%s1807_s0] sm:$0xff]  ;;  %1460 = vset.pattern.permute.xlu0 %v1503_v2  ;;  %v47_v3 = vld [vmem:[%s1808_s1 + $0x8] sm:$0xff]  ;;  %v48_v4 = vld [vmem:[%s1808_s1 + $0x10] sm:$0xff]  ;;  %1334 = vmatprep.subr.bf16.mxu1 %v1504_v6 }
   0x2   :  { %v46_v1 = vld [vmem:[%s1808_s1] sm:$0xff]  ;;  %v49_v5 = vld [vmem:[%s1808_s1 + $0x18] sm:$0xff]  ;;  %35 = vperm.xlu0 %1460, %v30_v0   ;;  %v31_v9 = vld [vmem:[%s1807_s0 + $0x8] sm:$0xff]  ;;  %1128 = vmatprep.mubr.msk.f32.mxu1 %vm1505_vm0, %v1506_v23 }
   0x3   :  { %v1302_v7 = vpack.c.bf16 %v47_v3, %v46_v1  ;;  %v1306_v8 = vpack.c.bf16 %v49_v5, %v48_v4  ;;  %v50_v10 = vld [vmem:[%s1808_s1 + $0x20] sm:$0xff]  ;;  %v51_v11 = vld [vmem:[%s1808_s1 + $0x28] sm:$0xff]  ;;  %v146_v15 = vld [vmem:[%s1812_s5 + $0x10] sm:$0xff] }
   0x4   :  { %v144_v12 = vld [vmem:[%s1812_s5] sm:$0xff]  ;;  %v145_v13 = vld [vmem:[%s1812_s5 + $0x8] sm:$0xff]  ;;  %v147_v16 = vld [vmem:[%s1812_s5 + $0x18] sm:$0xff]  ;;  %v1310_v17 = vpack.c.bf16 %v51_v11, %v50_v10 }
   0x5   :  { %1303 = vmatprep.subr.bf16.mxu0 %v1302_v7  ;;  %v1585_v14 = vpack.c.bf16 %v145_v13, %v144_v12  ;;  %v52_v18 = vld [vmem:[%s1808_s1 + $0x30] sm:$0xff]  ;;  %v53_v19 = vld [vmem:[%s1808_s1 + $0x38] sm:$0xff]  ;;  %v1600_v20 = vpack.c.bf16 %v147_v16, %v146_v15  ;;  %v148_v21 = vld [vmem:[%s1812_s5 + $0x20] sm:$0xff] }
   0x6   :  { %1305 = vmatpush3.bf16.msra.mxu0 %v1302_v7  ;;  %38 = vperm.xlu0 %1460, %v31_v9   ;;  %v149_v22 = vld [vmem:[%s1812_s5 + $0x28] sm:$0xff] }
   0x7   :  { %1307 = vmatprep.subr.bf16.mxu0 %v1306_v8  ;;  %1336 = vmatpush3.bf16.msra.mxu1 %v1585_v14 }
   0x8   :  { %1337 = vmatprep.subr.bf16.mxu1 %v1504_v6 }
   0xa   :  { %1309 = vmatpush3.bf16.msra.mxu0 %v1306_v8 }
   0xb   :  { %13 = vsyncpa [#allocation3], 0  ;;  %1311 = vmatprep.subr.bf16.mxu0 %v1310_v17  ;;  %v1314_v24 = vpack.c.bf16 %v53_v19, %v52_v18  ;;  %v54_v25 = vld [vmem:[%s1808_s1 + $0x40] sm:$0xff]  ;;  %v55_v26 = vld [vmem:[%s1808_s1 + $0x48] sm:$0xff]  ;;  %1339 = vmatpush3.bf16.msra.mxu1 %v1600_v20  ;;  %v1618_v27 = vpack.c.bf16 %v149_v22, %v148_v21  ;;  %vm154_vm1 = vcmask 523264   ;;  %v32_v42 = vlaneseq  ;;  %s1508_s28 = smov [#allocation2]  }
   0xc   :  { %1340 = vmatprep.subr.bf16.mxu1 %v1504_v6  ;;  %v150_v28 = vld [vmem:[%s1812_s5 + $0x30] sm:$0xff]  ;;  %v151_v29 = vld [vmem:[%s1812_s5 + $0x38] sm:$0xff]  ;;  %v1318_v30 = vpack.c.bf16 %v55_v26, %v54_v25  ;;  %v58_v35 = vld [vmem:[%s1808_s1 + $0x60] sm:$0xff]  ;;  %v1507_v45 = vmov 1.0   ;;  %s944_s29 = sshll.u32 %s1508_s28, 4  ;;  %s945_s29 = int_to_ptr.vmem [resolvable:$true] %s944_s29 }
   0xd   :  { %v56_v31 = vld [vmem:[%s1808_s1 + $0x50] sm:$0xff]  ;;  %v57_v32 = vld [vmem:[%s1808_s1 + $0x58] sm:$0xff]  ;;  %v1634_v33 = vpack.c.bf16 %v151_v29, %v150_v28  ;;  %v59_v36 = vld [vmem:[%s1808_s1 + $0x68] sm:$0xff]  ;;  %v1666_v43 = vand.u32 127, %v32_v42  ;;  %p1484_p1 = scmp.lt.s32.totalorder %s945_s29, %s945_s29 }
   0xe   :  { %1313 = vmatpush3.bf16.msra.mxu0 %v1310_v17  ;;  %v1322_v34 = vpack.c.bf16 %v57_v32, %v56_v31  ;;  %v153_v37 = vld [vmem:[%s1811_s4] sm:$0x3]  ;;  %v1326_v38 = vpack.c.bf16 %v59_v36, %v58_v35  ;;  %v60_v39 = vld [vmem:[%s1808_s1 + $0x70] sm:$0xff]  ;;  %v61_v40 = vld [vmem:[%s1808_s1 + $0x78] sm:$0xff] }
   0xf   :  { %1315 = vmatprep.subr.bf16.mxu0 %v1314_v24  ;;  %1342 = vmatpush3.bf16.msra.mxu1 %v1618_v27  ;;  %v1330_v41 = vpack.c.bf16 %v61_v40, %v60_v39  ;;  %v954_v49 = vld [vmem:[%s1809_s2] ss:$0 sm:$0xff]  ;;  %vm229_vm4 = vcmp.lt.s32.totalorder %v1666_v43, 32  ;;  %v852_v32 = vld [vmem:[%s1813_s6 + $0x18] sm:$0xff]  ;;  %v854_v35 = vld [vmem:[%s1813_s6 + $0x28] sm:$0xff]  ;;  %vm844_vm5 = vcmp.ge.s32.totalorder %v1666_v43, 32 }
  0x10   :  { %1343 = vmatprep.subr.bf16.mxu1 %v1504_v6  ;;  %v849_v29 = vld [vmem:[%s1813_s6] sm:$0xff]  ;;  %vm845_vm6 = vcmp.lt.s32.totalorder %v1666_v43, 64 }
  0x11   :  { %v965_v40 = vld [vmem:[%s1810_s3] ss:$0 sm:$0xff]  ;;  %vm846_vm7 = vmand %vm844_vm5, %vm845_vm6  ;;  %s1479_s3 = scalar_lea.vmem %s945_s29, 32 }
  0x12   :  { %1317 = vmatpush3.bf16.msra.mxu0 %v1314_v24  ;;  %p1480_p0 = scmp.ne.s32.totalorder %s945_s29, %s1479_s3  ;;  %p1485_p2 = scmp.lt.s32.totalorder %s1479_s3, %s1479_s3 }
  0x13   :  { %1319 = vmatprep.subr.bf16.mxu0 %v1318_v30  ;;  %1345 = vmatpush3.bf16.msra.mxu1 %v1634_v33 }
  0x14   :  { %1346 = vmatprep.subr.bf16.mxu1 %v1504_v6  ;;  %p1486_p3 = por %p1485_p2, %p1484_p1 }
  0x16   :  { %1321 = vmatpush3.bf16.msra.mxu0 %v1318_v30  ;;  %1129 = vmatmul.mubr.msk.f32.vlgmr.msra.gmra.mrb[0].mxu1 %vm154_vm1, %v153_v37  ;;  %v850_v30 = vld [vmem:[%s1813_s6 + $0x8] sm:$0xff]  ;;  %p1487_p4 = pnand %p1486_p3, %p1480_p0 }
  0x17   :  { %1323 = vmatprep.subr.bf16.mxu0 %v1322_v34  ;;  %1348 = vmatpush3.bf16.msra.mxu1 %v1585_v14  ;;  %v1443_v31 = vpack.c.bf16 %v850_v30, %v849_v29 }
  0x18   :  { %1147 = vmatprep.mubr.msk.f32.mxu1 %vm1505_vm0, %v1506_v23  ;;  %1349 = vmatprep.subr.bf16.mxu1 %v1504_v6 }
  0x1a   :  { %1325 = vmatpush3.bf16.msra.mxu0 %v1322_v34  ;;  %v853_v34 = vld [vmem:[%s1813_s6 + $0x20] sm:$0xff] }
  0x1b   :  { %1327 = vmatprep.subr.bf16.mxu0 %v1326_v38  ;;  %1351 = vmatpush3.bf16.msra.mxu1 %v1600_v20  ;;  %v1449_v36 = vpack.c.bf16 %v854_v35, %v853_v34 }
  0x1c   :  { %1352 = vmatprep.subr.bf16.mxu1 %v1504_v6 }
  0x1e   :  { %1329 = vmatpush3.bf16.msra.mxu0 %v1326_v38  ;;  %v856_v38 = vld [vmem:[%s1813_s6 + $0x38] sm:$0xff] }
  0x1f   :  { %1331 = vmatprep.subr.bf16.mxu0 %v1330_v41  ;;  %1354 = vmatpush3.bf16.msra.mxu1 %v1618_v27 }
  0x20   :  { %1355 = vmatprep.subr.bf16.mxu1 %v1504_v6 }
  0x22   :  { %1333 = vmatpush3.bf16.msra.mxu0 %v1330_v41 }
  0x23   :  { %1358 = vmatprep.subr.bf16.mxu0 %v1504_v6  ;;  %1357 = vmatpush3.bf16.msra.mxu1 %v1634_v33 }
  0x24   :  { %1370 = vmatprep.subr.bf16.mxu1 %v1504_v6 }
  0x81   :  { %v36_v44 = vpop.permute.xlu0 %35 }
  0x82   :  { %vm40_vm2 = vcmp.eq.s32.totalorder %v1666_v43, %v36_v44 }
  0x83   :  { %1109 = vmatprep.mubr.msk.f32.mxu0 %vm40_vm2, %v1507_v45 }
  0x85   :  { %v39_v46 = vpop.permute.xlu0 %38 }
  0x86   :  { %vm41_vm3 = vcmp.eq.s32.totalorder %v1666_v43, %v39_v46 }
  0x87   :  { %1110 = vmatmul.mubr.msk.f32.vlgmr.msra.gmra.mrb[0].mxu0 %vm41_vm3, %v1507_v45 }
  0x88   :  { %1360 = vmatpush3.bf16.msra.mxu0 %v1585_v14  ;;  %1166 = vmatprep.mubr.msk.f32.mxu0 %vm1505_vm0, %v1506_v23 }
  0x89   :  { %1361 = vmatprep.subr.bf16.mxu0 %v1504_v6 }
  0x8c   :  { %1363 = vmatpush3.bf16.msra.mxu0 %v1600_v20 }
  0x8d   :  { %1364 = vmatprep.subr.bf16.mxu0 %v1504_v6 }
  0x90   :  { %1366 = vmatpush3.bf16.msra.mxu0 %v1618_v27 }
  0x91   :  { %1367 = vmatprep.subr.bf16.mxu0 %v1504_v6 }
  0x94   :  { %1369 = vmatpush3.bf16.msra.mxu0 %v1634_v33 }
  0x95   :  { %1382 = vmatprep.subr.bf16.mxu0 %v1504_v6 }
  0xe9   :  { %v224_v47 = vpop.f32.mrb[0].mxu1 }
  0xea   :  { %v1130_v48 = vpop.f32.mrb[1].mxu1 }
 0x15a   :  { %v1111_v50 = vpop.f32.mrb[0].mxu0 }
 0x15b   :  { %v1683_v51 = vadd.f32 %v1111_v50, %v954_v49  ;;  %v135_v52 = vpop.f32.mrb[1].mxu0 }
 0x15c   :  { %v136_v53 = vadd.f32 %v954_v49, %v135_v52 }
 0x15d   :  { %v537_v13 = vrot.slane %v1683_v51, 2  ;;  %v613_v19 = vrot.slane %v1683_v51, 4 }
 0x15e   :  { %v225_v54 = vadd.f32 %v224_v47, %v136_v53  ;;  %v234_v57 = vrot.slane %v136_v53, 2  ;;  %v310_v62 = vrot.slane %v136_v53, 4  ;;  %v386_v3 = vrot.slane %v136_v53, 6 }
 0x160   :  { %1461 = vtanh.f32 %v225_v54 }
 0x16a   :  { %v1462_v55 = vpop.eup %1461 }
 0x16b   :  { %v232_v56 = vsel %vm229_vm4, %v1462_v55, %v153_v37  ;;  %v855_v37 = vld [vmem:[%s1813_s6 + $0x30] sm:$0xff] }
 0x16c   :  { %1148 = vmatmul.mubr.msk.f32.vlgmr.msra.gmra.mrb[2].mxu1 %vm154_vm1, %v232_v56  ;;  %v1452_v39 = vpack.c.bf16 %v856_v38, %v855_v37 }
 0x16d   :  { %1372 = vmatpush3.bf16.msra.mxu1 %v1585_v14  ;;  %1185 = vmatprep.mubr.msk.f32.mxu1 %vm1505_vm0, %v1506_v23 }
 0x16e   :  { %1373 = vmatprep.subr.bf16.mxu1 %v1504_v6 }
 0x171   :  { %1375 = vmatpush3.bf16.msra.mxu1 %v1600_v20 }
 0x172   :  { %1376 = vmatprep.subr.bf16.mxu1 %v1504_v6 }
 0x175   :  { %1378 = vmatpush3.bf16.msra.mxu1 %v1618_v27 }
 0x176   :  { %1379 = vmatprep.subr.bf16.mxu1 %v1504_v6 }
 0x179   :  { %1381 = vmatpush3.bf16.msra.mxu1 %v1634_v33 }
 0x17a   :  { %1394 = vmatprep.subr.bf16.mxu1 %v1504_v6 }
 0x23f   :  { %v305_v58 = vpop.f32.mrb[2].mxu1 }
 0x240   :  { %v306_v59 = vadd.f32 %v305_v58, %v234_v57  ;;  %v1149_v60 = vpop.f32.mrb[3].mxu1 }
 0x242   :  { %1463 = vtanh.f32 %v306_v59 }
 0x24c   :  { %v1464_v61 = vpop.eup %1463 }
 0x24d   :  { %1167 = vmatmul.mubr.msk.f32.vlgmr.msra.gmra.mrb[2].mxu0 %vm154_vm1, %v1464_v61 }
 0x24e   :  { %1384 = vmatpush3.bf16.msra.mxu0 %v1585_v14  ;;  %1204 = vmatprep.mubr.msk.f32.mxu0 %vm1505_vm0, %v1506_v23 }
 0x24f   :  { %1385 = vmatprep.subr.bf16.mxu0 %v1504_v6 }
 0x252   :  { %1387 = vmatpush3.bf16.msra.mxu0 %v1600_v20 }
 0x253   :  { %1388 = vmatprep.subr.bf16.mxu0 %v1504_v6 }
 0x256   :  { %1390 = vmatpush3.bf16.msra.mxu0 %v1618_v27 }
 0x257   :  { %1391 = vmatprep.subr.bf16.mxu0 %v1504_v6 }
 0x25a   :  { %1393 = vmatpush3.bf16.msra.mxu0 %v1634_v33 }
 0x25b   :  { %1406 = vmatprep.subr.bf16.mxu0 %v1504_v6 }
 0x320   :  { %v381_v63 = vpop.f32.mrb[2].mxu0 }
 0x321   :  { %v382_v0 = vadd.f32 %v381_v63, %v310_v62  ;;  %v1168_v1 = vpop.f32.mrb[3].mxu0 }
 0x323   :  { %1465 = vtanh.f32 %v382_v0 }
 0x32d   :  { %v1466_v2 = vpop.eup %1465 }
 0x32e   :  { %1186 = vmatmul.mubr.msk.f32.vlgmr.msra.gmra.mrb[4].mxu1 %vm154_vm1, %v1466_v2 }
 0x32f   :  { %1396 = vmatpush3.bf16.msra.mxu1 %v1585_v14  ;;  %1223 = vmatprep.mubr.msk.f32.mxu1 %vm1505_vm0, %v1506_v23 }
 0x330   :  { %1397 = vmatprep.subr.bf16.mxu1 %v1504_v6 }
 0x333   :  { %1399 = vmatpush3.bf16.msra.mxu1 %v1600_v20 }
 0x334   :  { %1400 = vmatprep.subr.bf16.mxu1 %v1504_v6 }
 0x337   :  { %1402 = vmatpush3.bf16.msra.mxu1 %v1618_v27 }
 0x338   :  { %1403 = vmatprep.subr.bf16.mxu1 %v1504_v6 }
 0x33b   :  { %1405 = vmatpush3.bf16.msra.mxu1 %v1634_v33 }
 0x33c   :  { %1418 = vmatprep.subr.bf16.mxu1 %v1504_v6 }
 0x401   :  { %v457_v4 = vpop.f32.mrb[4].mxu1 }
 0x402   :  { %v458_v5 = vadd.f32 %v457_v4, %v386_v3  ;;  %v1187_v7 = vpop.f32.mrb[5].mxu1 }
 0x404   :  { %1467 = vtanh.f32 %v458_v5 }
 0x40e   :  { %v1468_v8 = vpop.eup %1467 }
 0x40f   :  { %1205 = vmatmul.mubr.msk.f32.vlgmr.msra.gmra.mrb[4].mxu0 %vm154_vm1, %v1468_v8 }
 0x410   :  { %1408 = vmatpush3.bf16.msra.mxu0 %v1585_v14  ;;  %1242 = vmatprep.mubr.msk.f32.mxu0 %vm1505_vm0, %v1506_v23 }
 0x411   :  { %1409 = vmatprep.subr.bf16.mxu0 %v1504_v6 }
 0x414   :  { %1411 = vmatpush3.bf16.msra.mxu0 %v1600_v20 }
 0x415   :  { %1412 = vmatprep.subr.bf16.mxu0 %v1504_v6 }
 0x418   :  { %1414 = vmatpush3.bf16.msra.mxu0 %v1618_v27 }
 0x419   :  { %1415 = vmatprep.subr.bf16.mxu0 %v1504_v6 }
 0x41c   :  { %1417 = vmatpush3.bf16.msra.mxu0 %v1634_v33 }
 0x41d   :  { %1430 = vmatprep.subr.bf16.mxu0 %v1504_v6 }
 0x4e2   :  { %v531_v9 = vpop.f32.mrb[4].mxu0 }
 0x4e3   :  { %v532_v10 = vadd.f32 %v531_v9, %v1683_v51  ;;  %v1206_v11 = vpop.f32.mrb[5].mxu0 }
 0x4e5   :  { %1469 = vtanh.f32 %v532_v10 }
 0x4ef   :  { %v1470_v12 = vpop.eup %1469 }
 0x4f0   :  { %1224 = vmatmul.mubr.msk.f32.vlgmr.msra.gmra.mrb[6].mxu1 %vm154_vm1, %v1470_v12 }
 0x4f1   :  { %1420 = vmatpush3.bf16.msra.mxu1 %v1585_v14  ;;  %1261 = vmatprep.mubr.msk.f32.mxu1 %vm1505_vm0, %v1506_v23 }
 0x4f2   :  { %1421 = vmatprep.subr.bf16.mxu1 %v1504_v6 }
 0x4f5   :  { %1423 = vmatpush3.bf16.msra.mxu1 %v1600_v20 }
 0x4f6   :  { %1424 = vmatprep.subr.bf16.mxu1 %v1504_v6 }
 0x4f9   :  { %1426 = vmatpush3.bf16.msra.mxu1 %v1618_v27 }
 0x4fa   :  { %1427 = vmatprep.subr.bf16.mxu1 %v1504_v6 }
 0x4fd   :  { %1429 = vmatpush3.bf16.msra.mxu1 %v1634_v33 }
 0x4fe   :  { %1442 = vmatprep.subr.bf16.mxu1 %v1504_v6 }
 0x5c3   :  { %v608_v15 = vpop.f32.mrb[6].mxu1 }
 0x5c4   :  { %v609_v16 = vadd.f32 %v608_v15, %v537_v13  ;;  %v1225_v17 = vpop.f32.mrb[7].mxu1 }
 0x5c6   :  { %1471 = vtanh.f32 %v609_v16 }
 0x5d0   :  { %v1472_v18 = vpop.eup %1471 }
 0x5d1   :  { %1243 = vmatmul.mubr.msk.f32.vlgmr.msra.gmra.mrb[6].mxu0 %vm154_vm1, %v1472_v18 }
 0x5d2   :  { %1432 = vmatpush3.bf16.msra.mxu0 %v1585_v14  ;;  %1280 = vmatprep.mubr.msk.f32.mxu0 %vm1505_vm0, %v1506_v23 }
 0x5d3   :  { %1433 = vmatprep.subr.bf16.mxu0 %v1504_v6 }
 0x5d6   :  { %1435 = vmatpush3.bf16.msra.mxu0 %v1600_v20  ;;  %v689_v20 = vrot.slane %v1683_v51, 6 }
 0x5d7   :  { %1436 = vmatprep.subr.bf16.mxu0 %v1504_v6 }
 0x5da   :  { %1438 = vmatpush3.bf16.msra.mxu0 %v1618_v27 }
 0x5db   :  { %1439 = vmatprep.subr.bf16.mxu0 %v1504_v6 }
 0x5de   :  { %1441 = vmatpush3.bf16.msra.mxu0 %v1634_v33 }
 0x6a4   :  { %v684_v21 = vpop.f32.mrb[6].mxu0 }
 0x6a5   :  { %v685_v22 = vadd.f32 %v684_v21, %v613_v19  ;;  %v1244_v14 = vpop.f32.mrb[7].mxu0 }
 0x6a7   :  { %1473 = vtanh.f32 %v685_v22 }
 0x6b1   :  { %v1474_v24 = vpop.eup %1473 }
 0x6b2   :  { %1262 = vmatmul.mubr.msk.f32.vlgmr.msra.gmra.mrb[8].mxu1 %vm154_vm1, %v1474_v24 }
 0x6b3   :  { %1299 = vmatprep.mubr.msk.f32.mxu1 %vm1505_vm0, %v1506_v23  ;;  %1444 = vmatpush3.bf16.msra.mxu1 %v1443_v31  ;;  %v851_v23 = vld [vmem:[%s1813_s6 + $0x10] sm:$0xff] }
 0x6b4   :  { %1445 = vmatprep.subr.bf16.mxu1 %v1504_v6  ;;  %v1446_v33 = vpack.c.bf16 %v852_v32, %v851_v23 }
 0x6b7   :  { %1447 = vmatpush3.bf16.msra.mxu1 %v1446_v33 }
 0x6b8   :  { %1448 = vmatprep.subr.bf16.mxu1 %v1504_v6 }
 0x6bb   :  { %1450 = vmatpush3.bf16.msra.mxu1 %v1449_v36 }
 0x6bc   :  { %1451 = vmatprep.subr.bf16.mxu1 %v1504_v6  ;;  %v967_v6 = vld [vmem:[%s1814_s7] ss:$0 sm:$0xff] }
 0x6bf   :  { %1453 = vmatpush3.bf16.msra.mxu1 %v1452_v39 }
 0x785   :  { %v760_v25 = vpop.f32.mrb[8].mxu1 }
 0x786   :  { %v761_v26 = vadd.f32 %v760_v25, %v689_v20  ;;  %v1263_v27 = vpop.f32.mrb[9].mxu1 }
 0x788   :  { %1475 = vtanh.f32 %v761_v26 }
 0x792   :  { %v1476_v28 = vpop.eup %1475 }
 0x793   :  { %1281 = vmatmul.mubr.msk.f32.vlgmr.msra.gmra.mrb[8].mxu0 %vm154_vm1, %v1476_v28 }
 0x866   :  { %v840_v41 = vpop.f32.mrb[8].mxu0 }
 0x867   :  { %v841_v42 = vadd.f32 %v965_v40, %v840_v41  ;;  %v1282_v44 = vpop.f32.mrb[9].mxu0 }
 0x869   :  { %1477 = vtanh.f32 %v841_v42 }
 0x873   :  { %v1478_v45 = vpop.eup %1477 }
 0x874   :  { %v848_v46 = vsel %vm846_vm7, %v1478_v45, %v1476_v28 }
 0x875   :  { %1300 = vmatmul.mubr.msk.f32.vlgmr.msra.gmra.mrb[10].mxu1 %vm154_vm1, %v848_v46 }
 0x948   :  { %v933_v47 = vpop.f32.mrb[10].mxu1 }
 0x949   :  { %v934_v48 = vadd.f32 %v967_v6, %v933_v47  ;;  %v1301_v49 = vpop.f32.mrb[11].mxu1 }
 0x94b   :  { %937 = vst [vmem:[#allocation2] sm:$0x3] %v934_v48 }
 0x94c   :  { %1490 = shalt.err (!%p1487_p4)
}
 0x94d   :  { %s1491_s10 = scalar_lea.hbm %s1815_s8, 32 }
 0x94e   :  { %p1492_p5 = scmp.ne.s32.totalorder %s1815_s8, %s1491_s10  ;;  %p1495_p6 = scmp.lt.u32.totalorder %s1491_s10, %s1815_s8 }
 0x950   :  { %p1497_p7 = pnand %p1495_p6, %p1492_p5 }
 0x952   :  { %1500 = shalt.err (!%p1497_p7)
}
 0x953   :  { %947 = dma.vmem_to_hbm [thread:$0]  %s945_s29, 32, %s1815_s8, [#allocation3]  }
 0x954   :  { %1501 = dma.done.wait [#allocation3], 32  }
 0x955   :  { %1502 = vsyncadd [#allocation3], 4294967264 }
 0x956   :  { %951 = vsyncpa [#allocation3], 1 }

</bundles_post_ra>
